<compile_context>
chip_gen: v6e
topology: v6e:2x2x1
jax: 0.10.0
libtpu: 0.0.40
codegen_flags: <defaults>
</compile_context>

<pallas_src>
import math

import jax
import jax.numpy as jnp
from jax.experimental import pallas as pl
from jax.experimental.pallas import tpu as pltpu

IN_DIM = 50
HID_DIM = 100
HID_PAD = 128   # lane-dense hidden width (zero padded -> numerically exact)
OUT_DIM = 1


def _round_up(n, m):
    return (n + m - 1) // m * m


def diffusion_kernel(x_ref, w1_ref, b1_ref, w2_ref, b2_ref, o_ref):
    # fc1: cast x to bf16 in-kernel (HBM stream stays f32; VALU has slack for
    # the cast), bf16 MXU matmul with f32 accumulation, then bias + ReLU (VPU).
    xb = x_ref[...].astype(jnp.bfloat16)                         # (TB, 50)
    h = jnp.dot(xb, w1_ref[...], preferred_element_type=jnp.float32)
    h = jnp.maximum(h + b1_ref[...], 0.0)                        # (TB, 128) f32
    # fc2 as a lane-dense MXU contraction: (1,128) . (TB,128)^T -> (1, TB)
    # (contract-last-dims-of-both form, same as flash attention's q.k^T, so no
    #  h transpose is materialized; result row is lane-dense -> dense stores).
    y = jax.lax.dot_general(
        w2_ref[...], h,
        dimension_numbers=(((1,), (1,)), ((), ())),
        preferred_element_type=jnp.float32)                      # (1, TB)
    o_ref[...] = jax.nn.sigmoid(y + b2_ref[...]).astype(o_ref.dtype)


def _choose_tile(B, block_b):
    tb = _round_up(max(pl.cdiv(B, 8), 1), 8)   # aim for ~8 grid steps
    tb = max(tb, 512)                          # amortize per-step overhead
    tb = min(tb, block_b)                      # VMEM headroom (v5e-safe cap)
    tb = min(tb, _round_up(B, 8))              # never exceed (8-rounded) batch
    return max(tb, 8)


def diffusion_forward(t, x, params, *, block_b=8192):
    """t: unused (kept for API parity with the PyTorch forward).
    x: [B, 50] f32.  params: output of pack_params.  Returns [B, 1] f32."""
    del t  # unused, exactly as in the PyTorch forward
    w1, b1, w2, b2 = params
    B = x.shape[0]

    tb = _choose_tile(B, block_b)
    nb = pl.cdiv(B, tb)

    out = pl.pallas_call(
        diffusion_kernel,
        out_shape=jax.ShapeDtypeStruct((nb, 1, tb), jnp.float32),
        grid=(nb,),
        in_specs=[
            pl.BlockSpec((tb, IN_DIM), lambda i: (i, 0)),        # x: streamed f32
            pl.BlockSpec((IN_DIM, HID_PAD), lambda i: (0, 0)),   # W1: resident
            pl.BlockSpec((1, HID_PAD), lambda i: (0, 0)),        # b1: resident
            pl.BlockSpec((1, HID_PAD), lambda i: (0, 0)),        # w2 row: resident
            pl.BlockSpec((1, OUT_DIM), lambda i: (0, 0)),        # b2: resident
        ],
        out_specs=pl.BlockSpec((None, 1, tb), lambda i: (i, 0, 0)),  # lane-dense
        compiler_params=pltpu.CompilerParams(
            dimension_semantics=("parallel",),
            vmem_limit_bytes=32 * 1024 * 1024),
    )(x, w1, b1, w2, b2)

    # (nb, 1, tb) lane-dense rows -> (B, 1); any garbage tail rows from the
    # partial last block are sliced off (rows are independent, no leakage).
    return out.reshape(nb * tb)[:B].reshape(B, OUT_DIM)


def init_params(key):
    """Deterministic init mirroring PyTorch nn.Linear defaults
    (uniform(-1/sqrt(fan_in), 1/sqrt(fan_in)) for weight and bias).
    Stored pre-transposed as [in, out]."""
    k1, k2, k3, k4 = jax.random.split(key, 4)
    bound1 = 1.0 / math.sqrt(IN_DIM)
    bound2 = 1.0 / math.sqrt(HID_DIM)
    w1 = jax.random.uniform(k1, (IN_DIM, HID_DIM), jnp.float32, -bound1, bound1)
    b1 = jax.random.uniform(k2, (HID_DIM,), jnp.float32, -bound1, bound1)
    w2 = jax.random.uniform(k3, (HID_DIM, OUT_DIM), jnp.float32, -bound2, bound2)
    b2 = jax.random.uniform(k4, (OUT_DIM,), jnp.float32, -bound2, bound2)
    return w1, b1, w2, b2


def pack_params(w1, b1, w2, b2):
    """One-time prep: zero-pad hidden 100->128 (exact), cast W1 (MXU lhs weight)
    to bf16; biases and the fc2 row stay f32."""
    pad = HID_PAD - HID_DIM
    w1p = jnp.pad(w1, ((0, 0), (0, pad))).astype(jnp.bfloat16)   # (50, 128) bf16
    b1p = jnp.pad(b1, (0, pad)).reshape(1, HID_PAD)              # (1, 128)  f32
    w2p = jnp.pad(w2[:, 0], (0, pad)).reshape(1, HID_PAD)        # (1, 128)  f32
    b2p = b2.reshape(1, OUT_DIM)                                 # (1, 1)    f32
    return w1p, b1p, w2p, b2p


def _reference_packed(x, packed):
    """f32 reference using the same bf16-cast fc1 operands as the kernel."""
    w1p, b1p, w2p, b2p = packed
    xb = x.astype(jnp.bfloat16).astype(jnp.float32)
    h = jnp.maximum(xb @ w1p.astype(jnp.float32) + b1p, 0.0)
    return jax.nn.sigmoid(jnp.sum(h * w2p, axis=-1, keepdims=True) + b2p)


def _reference_f32(x, w1, b1, w2, b2):
    """Full-precision reference of the original module math."""
    h = jnp.maximum(x @ w1 + b1[None, :], 0.0)
    return jax.nn.sigmoid(h @ w2 + b2[None, :])


if __name__ == "__main__":
    key = jax.random.PRNGKey(0)
    kp, kx1, kx2, kx3 = jax.random.split(key, 4)
    raw = init_params(kp)
    packed = pack_params(*raw)
    t = jnp.float32(0.5)  # unused by the forward pass

    # case 1: small batch, multiple of 8, single block
    B1 = 8
    x1 = jax.random.normal(kx1, (B1, IN_DIM), jnp.float32)
    out1 = jax.block_until_ready(diffusion_forward(t, x1, packed))
    assert out1.shape == (B1, OUT_DIM)
    assert bool(jnp.all(jnp.isfinite(out1)))
    assert jnp.allclose(out1, _reference_packed(x1, packed), atol=1e-3)
    assert jnp.allclose(out1, _reference_f32(x1, *raw), atol=2e-2)

    # case 2: ragged small batch (partial block; OOB tail rows discarded)
    B2 = 10
    x2 = jax.random.normal(kx2, (B2, IN_DIM), jnp.float32)
    out2 = jax.block_until_ready(diffusion_forward(t, x2, packed))
    assert out2.shape == (B2, OUT_DIM)
    assert bool(jnp.all(jnp.isfinite(out2)))
    assert jnp.allclose(out2, _reference_packed(x2, packed), atol=1e-3)
    assert jnp.allclose(out2, _reference_f32(x2, *raw), atol=2e-2)

    # case 3: multi-block grid with a ragged last block
    B3 = 1003
    x3 = jax.random.normal(kx3, (B3, IN_DIM), jnp.float32)
    out3 = jax.block_until_ready(diffusion_forward(t, x3, packed))
    assert out3.shape == (B3, OUT_DIM)
    assert bool(jnp.all(jnp.isfinite(out3)))
    assert jnp.allclose(out3, _reference_packed(x3, packed), atol=1e-3)
    assert jnp.allclose(out3, _reference_f32(x3, *raw), atol=2e-2)

    print("KERNEL_OK")
</pallas_src>

<mosaic_0001>
module attributes {stable_mosaic.version = 11 : i64} {
  func.func @diffusion_kernel(%arg0: i32, %arg1: memref<8x50xf32, #tpu.memory_space<vmem>>, %arg2: memref<50x128xbf16, #tpu.memory_space<vmem>>, %arg3: memref<1x128xf32, #tpu.memory_space<vmem>>, %arg4: memref<1x128xf32, #tpu.memory_space<vmem>>, %arg5: memref<1x1xf32, #tpu.memory_space<vmem>>, %arg6: memref<1x1x8xf32, #tpu.memory_space<vmem>>) attributes {dimension_semantics = [#tpu.dimension_semantics<parallel>], iteration_bounds = array<i64: 1>, scalar_prefetch = 0 : i64, scratch_operands = 0 : i64, tpu.core_type = #tpu.core_type<tc>, window_params = [{transform_indices = @transform_0, window_bounds = array<i64: 8, 50>}, {pipeline_mode = #tpu.pipeline_mode<synchronous>, transform_indices = @transform_1, window_bounds = array<i64: 50, 128>}, {pipeline_mode = #tpu.pipeline_mode<synchronous>, transform_indices = @transform_2, window_bounds = array<i64: 1, 128>}, {pipeline_mode = #tpu.pipeline_mode<synchronous>, transform_indices = @transform_3, window_bounds = array<i64: 1, 128>}, {pipeline_mode = #tpu.pipeline_mode<synchronous>, transform_indices = @transform_4, window_bounds = array<i64: 1, 1>}, {transform_indices = @transform_5, window_bounds = array<i64: 1, 1, 8>}]} {
    %c0 = arith.constant 0 : index
    %c0_0 = arith.constant 0 : index
    %0 = vector.load %arg1[%c0, %c0_0] : memref<8x50xf32, #tpu.memory_space<vmem>>, vector<8x50xf32>
    %1 = arith.truncf %0 : vector<8x50xf32> to vector<8x50xbf16>
    %c0_1 = arith.constant 0 : index
    %c0_2 = arith.constant 0 : index
    %2 = vector.load %arg2[%c0_1, %c0_2] : memref<50x128xbf16, #tpu.memory_space<vmem>>, vector<50x128xbf16>
    %cst = arith.constant dense<0.000000e+00> : vector<8x128xf32>
    %3 = tpu.matmul %1, %2, %cst {dimension_numbers = #tpu.dot_dimension_numbers<[1], [0], [0], [1], [0, 0, 1, 1], [], []>} : vector<8x50xbf16>, vector<50x128xbf16>, vector<8x128xf32> -> vector<8x128xf32>
    %c0_3 = arith.constant 0 : index
    %c0_4 = arith.constant 0 : index
    %4 = vector.load %arg3[%c0_3, %c0_4] : memref<1x128xf32, #tpu.memory_space<vmem>>, vector<1x128xf32>
    %5 = vector.broadcast %4 : vector<1x128xf32> to vector<8x128xf32>
    %6 = arith.addf %3, %5 : vector<8x128xf32>
    %cst_5 = arith.constant 0.000000e+00 : f32
    %7 = vector.broadcast %cst_5 : f32 to vector<8x128xf32>
    %8 = arith.maximumf %6, %7 : vector<8x128xf32>
    %c0_6 = arith.constant 0 : index
    %c0_7 = arith.constant 0 : index
    %9 = vector.load %arg4[%c0_6, %c0_7] : memref<1x128xf32, #tpu.memory_space<vmem>>, vector<1x128xf32>
    %cst_8 = arith.constant dense<0.000000e+00> : vector<1x8xf32>
    %10 = tpu.matmul %9, %8, %cst_8 {dimension_numbers = #tpu.dot_dimension_numbers<[1], [1], [0], [0], [0, 0, 1, 0], [], []>} : vector<1x128xf32>, vector<8x128xf32>, vector<1x8xf32> -> vector<1x8xf32>
    %c0_9 = arith.constant 0 : index
    %c0_10 = arith.constant 0 : index
    %11 = vector.load %arg5[%c0_9, %c0_10] : memref<1x1xf32, #tpu.memory_space<vmem>>, vector<1x1xf32>
    %12 = vector.broadcast %11 : vector<1x1xf32> to vector<1x8xf32>
    %13 = arith.addf %10, %12 : vector<1x8xf32>
    %14 = arith.negf %13 : vector<1x8xf32>
    %15 = math.exp %14 : vector<1x8xf32>
    %cst_11 = arith.constant 1.000000e+00 : f32
    %16 = vector.broadcast %cst_11 : f32 to vector<1x8xf32>
    %17 = arith.addf %16, %15 : vector<1x8xf32>
    %18 = arith.divf %16, %17 : vector<1x8xf32>
    %c0_12 = arith.constant 0 : index
    %c0_13 = arith.constant 0 : index
    %c0_14 = arith.constant 0 : index
    %19 = vector.load %arg6[%c0_12, %c0_13, %c0_14] : memref<1x1x8xf32, #tpu.memory_space<vmem>>, vector<1x1x8xf32>
    %20 = vector.shape_cast %19 : vector<1x1x8xf32> to vector<1x8xf32>
    %21 = vector.shape_cast %18 : vector<1x8xf32> to vector<1x1x8xf32>
    tpu.vector_store %arg6[%c0_12, %c0_13, %c0_14], %21 {strides = array<i32>} : memref<1x1x8xf32, #tpu.memory_space<vmem>>, vector<1x1x8xf32>,
    return
  }
  func.func @transform_0(%arg0: i32) -> (i32, i32) {
    %c0_i32 = arith.constant 0 : i32
    %c0_i32_0 = arith.constant 0 : i32
    return %arg0, %c0_i32 : i32, i32
  }
  func.func @transform_1(%arg0: i32) -> (i32, i32) {
    %c0_i32 = arith.constant 0 : i32
    %c0_i32_0 = arith.constant 0 : i32
    %c0_i32_1 = arith.constant 0 : i32
    return %c0_i32, %c0_i32_0 : i32, i32
  }
  func.func @transform_2(%arg0: i32) -> (i32, i32) {
    %c0_i32 = arith.constant 0 : i32
    %c0_i32_0 = arith.constant 0 : i32
    %c0_i32_1 = arith.constant 0 : i32
    return %c0_i32, %c0_i32_0 : i32, i32
  }
  func.func @transform_3(%arg0: i32) -> (i32, i32) {
    %c0_i32 = arith.constant 0 : i32
    %c0_i32_0 = arith.constant 0 : i32
    %c0_i32_1 = arith.constant 0 : i32
    return %c0_i32, %c0_i32_0 : i32, i32
  }
  func.func @transform_4(%arg0: i32) -> (i32, i32) {
    %c0_i32 = arith.constant 0 : i32
    %c0_i32_0 = arith.constant 0 : i32
    %c0_i32_1 = arith.constant 0 : i32
    return %c0_i32, %c0_i32_0 : i32, i32
  }
  func.func @transform_5(%arg0: i32) -> (i32, i32, i32) {
    %c0_i32 = arith.constant 0 : i32
    %c0_i32_0 = arith.constant 0 : i32
    %c0_i32_1 = arith.constant 0 : i32
    return %arg0, %c0_i32, %c0_i32_0 : i32, i32, i32
  }
}

</mosaic_0001>

<bundles_post_ra>
// kernel: tpu_custom_call.1
= control target key start
LH: loop header
LB: loop body
LE: loop exit
PB: predicated region body
PF: predicated region fallthrough
CT: control target
= control target key end

     0   :  { %s411_s0 = inlined_call_operand.hbm [shape: f32[8,50], index: 0, kind: input, shape index: {}]   ;;  %s412_s1 = inlined_call_operand.hbm [shape: bf16[50,128], index: 1, kind: input, shape index: {}]   ;;  %s413_s2 = inlined_call_operand.vmem [shape: f32[1,128], index: 2, kind: input, shape index: {}]   ;;  %s414_s3 = inlined_call_operand.vmem [shape: f32[1,128], index: 3, kind: input, shape index: {}]   ;;  %s415_s4 = inlined_call_operand.<no memory space> [shape: f32[1,1], index: 4, kind: input, shape index: {}]   ;;  %s416_s5 = inlined_call_operand.hbm [shape: f32[1,1,8], index: 5, kind: output, shape index: {}]  }
   0x1   :  { %v10_v0 = vstv %s415_s4 }
   0x2   :  { %11 = vst [vmem:[#allocation2] sm:$0x1] %v10_v0 }
   0x3   :  { %12 = vsyncpa [#allocation4], 0 }
   0x4   :  { %13 = vsyncpa [#allocation7], 0 }
   0x5   :  { %14 = vsyncpa [#allocation5], 0  ;;  %s355_s20 = smov [#allocation3]   ;;  %s356_s22 = smov [#allocation6]  }
   0x6   :  { %s21_s21 = sshll.u32 %s355_s20, 4  ;;  %s30_s23 = sshll.u32 %s356_s22, 4  ;;  %s22_s21 = int_to_ptr.vmem [resolvable:$true] %s21_s21  ;;  %s31_s23 = int_to_ptr.vmem [resolvable:$true] %s30_s23 }
   0x7   :  { %s297_s24 = scalar_lea.vmem %s22_s21, 128  ;;  %p302_p1 = scmp.lt.s32.totalorder %s22_s21, %s22_s21 }
   0x8   :  { %p298_p0 = scmp.ne.s32.totalorder %s22_s21, %s297_s24  ;;  %p303_p2 = scmp.lt.s32.totalorder %s297_s24, %s297_s24 }
   0xa   :  { %p304_p3 = por %p303_p2, %p302_p1 }
   0xc   :  { %p305_p4 = pnand %p304_p3, %p298_p0 }
   0xe   :  { %308 = shalt.err (!%p305_p4)
}
   0xf   :  { %24 = dma.hbm_to_vmem [thread:$0]  %s411_s0, 128, %s22_s21, [#allocation4]  }
  0x10   :  { %s317_s4 = scalar_lea.vmem %s31_s23, 448  ;;  %p322_p6 = scmp.lt.s32.totalorder %s31_s23, %s31_s23 }
  0x11   :  { %p318_p5 = scmp.ne.s32.totalorder %s31_s23, %s317_s4  ;;  %p323_p7 = scmp.lt.s32.totalorder %s317_s4, %s317_s4 }
  0x13   :  { %p324_p8 = por %p323_p7, %p322_p6 }
  0x15   :  { %p325_p9 = pnand %p324_p8, %p318_p5 }
  0x17   :  { %328 = shalt.err (!%p325_p9)
}
  0x18   :  { %s357_s27 = smov 64   ;;  %s358_s28 = smov 4  }
  0x19   :  { %36 = dma.hbm_to_vmem [thread:$0]  %s412_s1, 448, %s31_s23, [#allocation7], %s357_s27, %s357_s27, %s358_s28  }
  0x1a   :  { %349 = dma.done.wait [#allocation4], 128  }
  0x1b   :  { %350 = vsyncadd [#allocation4], 4294967168 }
  0x1c   :  { %351 = dma.done.wait [#allocation7], 448  }
  0x1d   :  { %352 = vsyncadd [#allocation7], 4294966848  ;;  %v359_v1 = vmov 0.0   ;;  %vm360_vm0 = vmmov 0   ;;  %vm91_vm1 = vcmask 1040384   ;;  %v282_v4 = vld [vmem:[#allocation6 + $0x10] sm:$0xff]   ;;  %v143_v19 = vlaneseq }
  0x1e   :  { %255 = vmatprep.subr.bf16.mxu0 %v359_v1  ;;  %263 = vmatprep.mubr.msk.bf16.mxu0 %vm360_vm0, %v359_v1  ;;  %v281_v2 = vld [vmem:[#allocation6 + $0x18] ss:$0 sps:$4 sm:$0x11]   ;;  %v283_v5 = vld [vmem:[#allocation6 + $0x8] sm:$0xff]   ;;  %v284_v6 = vld [vmem:[#allocation6] sm:$0xff]   ;;  %vm87_vm2 = vcmask 408576  }
  0x1f   :  { %267 = vmatprep.subr.mxu1 %v359_v1  ;;  %269 = vmatprep.mubr.msk.f32.mxu1 %vm360_vm0, %v359_v1  ;;  %v93_v3 = vsel %vm91_vm1, %v281_v2, 0  ;;  %v50_v7 = vld [vmem:[#allocation3] sm:$0xff]  ;;  %v137_v9 = vld [vmem:[#allocation2] sm:$0x1]  ;;  %v361_v10 = vmov 0   ;;  %v144_v20 = vshrl.u32 %v143_v19, 7 }
  0x20   :  { %256 = vmatpush3.bf16.msra.mxu0 %v93_v3  ;;  %v51_v8 = vpack.c.bf16 %v50_v7, %v50_v7  ;;  %280 = vset.pattern.permute.xlu0 %v361_v10  ;;  %v241_v11 = vld [vmem:[%s413_s2] ss:$0 sm:$0xff]  ;;  %s362_s2 = smov [#allocation8]   ;;  %vm223_vm3 = vcmask 57344  }
  0x21   :  { %257 = vmatprep.subr.bf16.mxu0 %v359_v1  ;;  %140 = vperm.xlu0 %280, %v137_v9   ;;  %v136_v17 = vld [vmem:[%s414_s3] sm:$0x1]  ;;  %v145_v21 = vsub.s32 0, %v144_v20  ;;  %s231_s8 = sshll.u32 %s362_s2, 4  ;;  %s232_s8 = int_to_ptr.vmem [resolvable:$true] %s231_s8 }
  0x22   :  { %s329_s3 = scalar_lea.vmem %s232_s8, 16  ;;  %s333_s9 = scalar_lea.vmem %s232_s8, 32 }
  0x23   :  { %p330_p10 = scmp.ne.s32.totalorder %s232_s8, %s329_s3  ;;  %p334_p11 = scmp.lt.s32.totalorder %s232_s8, %s232_s8 }
  0x24   :  { %258 = vmatpush3.bf16.msra.mxu0 %v282_v4  ;;  %p335_p12 = scmp.lt.s32.totalorder %s333_s9, %s329_s3 }
  0x25   :  { %259 = vmatprep.subr.bf16.mxu0 %v359_v1 }
  0x26   :  { %p336_p13 = por %p335_p12, %p334_p11 }
  0x28   :  { %260 = vmatpush3.bf16.msra.mxu0 %v283_v5  ;;  %p337_p0 = pnand %p336_p13, %p330_p10 }
  0x29   :  { %261 = vmatprep.subr.bf16.mxu0 %v359_v1 }
  0x2c   :  { %262 = vmatpush3.bf16.msra.mxu0 %v284_v6 }
  0x2f   :  { %264 = vmatmul.mubr.msk.bf16.vlgmr.msra.gmra.mxu0 %vm87_vm2, %v51_v8 }
  0x9c   :  { %v141_v22 = vpop.permute.xlu0 %140 }
  0x9d   :  { %v146_v23 = vrot.slane %v141_v22, %v145_v21 }
  0xef   :  { %v129_v12 = vpop.f32.mrf.mxu0 }
  0xf0   :  { %v130_v13 = vadd.f32 %v241_v11, %v129_v12 }
  0xf1   :  { %v265_v14 = vpop.f32.mrf.mxu0 }
  0xf2   :  { %v135_v15 = vmax.f32 %v130_v13, 0.0 }
  0xf3   :  { %v132_v16 = vpop.f32.mrf.mxu0 }
  0xf4   :  { %268 = vmatpush3.xpose.msra.mxu1 %v135_v15 }
  0xf5   :  { %v266_v18 = vpop.f32.mrf.mxu0 }
  0xf7   :  { %270 = vmatmul.mubr.f32.vlgmr.msra.gmra.mxu1 %v136_v17 }
 0x1b7   :  { %v213_v24 = vpop.f32.mrf.mxu1 }
 0x1b8   :  { %v214_v25 = vadd.f32 %v213_v24, %v146_v23 }
 0x1b9   :  { %v271_v26 = vpop.f32.mrf.mxu1 }
 0x1ba   :  { %v247_v27 = vmul.f32 -1.442695, %v214_v25 }
 0x1bc   :  { %285 = vpow2.f32 %v247_v27 }
 0x1c9   :  { %v286_v28 = vpop.eup %285 }
 0x1ca   :  { %v220_v29 = vadd.f32 1.0, %v286_v28 }
 0x1cc   :  { %287 = vrcp.f32 %v220_v29 }
 0x1d9   :  { %v288_v30 = vpop.eup %287 }
 0x1da   :  { %224 = vst.msk [vmem:[#allocation8] sm:$0x1] %vm223_vm3, %v288_v30 }
 0x1db   :  { %340 = shalt.err (!%p337_p0)
}
 0x1dc   :  { %234 = dma.vmem_to_hbm [thread:$0]  %s232_s8, 16, %s416_s5, [#allocation5]  }
 0x1dd   :  { %353 = dma.done.wait [#allocation5], 16  }
 0x1de   :  { %354 = vsyncadd [#allocation5], 4294967280 }
 0x1df   :  { %238 = vsyncpa [#allocation4], 1 }
 0x1e0   :  { %239 = vsyncpa [#allocation7], 1 }
 0x1e1   :  { %240 = vsyncpa [#allocation5], 1 }

</bundles_post_ra>
